<compile_context>
chip_gen: v7x
topology: tpu7x:2x2x1
jax: 0.10.0
libtpu: 0.0.40
codegen_flags: <defaults>
</compile_context>

<pallas_src>
import functools

import jax
import jax.numpy as jnp
from jax.experimental import pallas as pl
from jax.experimental.pallas import tpu as pltpu


# Row-major 3x3 window order; must match the host-side weight reshape in prepare_params.
_OFFSETS = tuple((dy, dx) for dy in (-1, 0, 1) for dx in (-1, 0, 1))


def _basic_block_kernel(*refs, H, W, B_blk, Cin, Cout, has_downsample):
    """Processes B_blk images per grid step, NCHW-flattened (channels on sublanes,
    H*W on lanes).

    refs (in order):
      mask_ref : (9, H*W)        host-precomputed boundary-validity masks (1.0 / 0.0)
      x_ref    : (B_blk, Cin, HW) input images
      w1_ref   : (Cout, 9*Cin)    fused conv1 taps (BN1 scale folded in)
      b1_ref   : (Cout, 1)        folded BN1 bias
      w2_ref   : (Cout, 9*Cout)   fused conv2 taps (BN2 scale folded in)
      b2_ref   : (Cout, 1)        folded BN2 bias (+ downsample-BN bias when present)
      wd_ref   : (Cout, Cin)      1x1 downsample conv (only when has_downsample)
      out_ref  : (B_blk, Cout, HW) lane-dense output
      taps1_ref: (9*Cin,  HW)     VMEM scratch — stacked taps for conv1
      taps2_ref: (9*Cout, HW)     VMEM scratch — stacked taps for conv2
    """
    HW = H * W
    if has_downsample:
        (mask_ref, x_ref, w1_ref, b1_ref, w2_ref, b2_ref, wd_ref,
         out_ref, taps1_ref, taps2_ref) = refs
    else:
        (mask_ref, x_ref, w1_ref, b1_ref, w2_ref, b2_ref,
         out_ref, taps1_ref, taps2_ref) = refs
        wd_ref = None

    # Hoist loop-invariant loads (weights / biases / masks) out of the image loop.
    w1 = w1_ref[...]                                     # (Cout, 9*Cin)
    w2 = w2_ref[...]                                     # (Cout, 9*Cout)
    b1 = b1_ref[...]                                     # (Cout, 1)
    b2 = b2_ref[...]                                     # (Cout, 1)
    wd = wd_ref[...] if has_downsample else None         # (Cout, Cin) or None
    mask_rows = [mask_ref[pl.ds(t, 1), :] for t in range(9)]   # each (1, HW)

    def build_taps(inp, c, taps_ref):
        """Stack the 9 shifted + boundary-masked copies of inp into taps_ref (9*c, HW)."""
        for t, (dy, dx) in enumerate(_OFFSETS):
            off = dy * W + dx
            # shifted[p] = inp[p + off] (circular lane rotation on the XLU);
            # wrapped / out-of-image positions are zeroed by the precomputed mask.
            tap = inp if off == 0 else pltpu.roll(inp, shift=(-off) % HW, axis=1)
            if (dy, dx) != (0, 0):
                tap = tap * mask_rows[t]
            taps_ref[pl.ds(t * c, c), :] = tap

    for b in range(B_blk):
        xin = x_ref[b]                                   # (Cin, HW) f32

        # conv1 (+ folded BN1) as one fused-K matmul, then bias + ReLU.
        build_taps(xin, Cin, taps1_ref)
        out1 = jnp.maximum(
            jnp.dot(w1, taps1_ref[...], preferred_element_type=jnp.float32) + b1, 0.0)

        # conv2 (+ folded BN2) as one fused-K matmul (bias applied post-residual).
        build_taps(out1, Cout, taps2_ref)
        out2 = jnp.dot(w2, taps2_ref[...], preferred_element_type=jnp.float32)

        # Shortcut: trace-time branch — exact identity, or 1x1 conv (+ folded BN scale).
        if has_downsample:
            sc = jnp.dot(wd, xin, preferred_element_type=jnp.float32)
        else:
            sc = xin

        # Residual add + combined bias + ReLU, lane-dense store.
        out_ref[b] = jnp.maximum(out2 + sc + b2, 0.0)


def _pick_batch_block(B):
    """Largest divisor of B that still leaves >= 2 grid steps (keeps both v7x TCs busy
    via dimension_semantics=("parallel",)) while amortizing per-grid-step overhead."""
    if B <= 2:
        return 1
    for cand in range(B // 2, 0, -1):
        if B % cand == 0:
            return cand
    return 1


def _boundary_masks(H, W):
    """Host-precomputed (9, H*W) f32 validity masks for the 9 taps (row-major 3x3)."""
    HW = H * W
    pos = jnp.arange(HW, dtype=jnp.int32)
    py, px = pos // W, pos % W
    rows = []
    for dy, dx in _OFFSETS:
        m = jnp.ones((HW,), dtype=bool)
        if dy == -1:
            m = m & (py >= 1)
        elif dy == 1:
            m = m & (py <= H - 2)
        if dx == -1:
            m = m & (px >= 1)
        elif dx == 1:
            m = m & (px <= W - 2)
        rows.append(m)
    return jnp.stack(rows).astype(jnp.float32)


def basic_block_forward(x_nchw, params, *, batch_block=None):
    """Pallas BasicBlock forward.  x_nchw: (B, Cin, H, W) f32 -> (B, Cout, H, W) f32."""
    x = x_nchw.astype(jnp.float32)
    B, Cin, H, W = x.shape
    HW = H * W
    Cout = params["w1"].shape[0]
    has_ds = bool(params["has_downsample"])
    B_blk = batch_block if batch_block is not None else _pick_batch_block(B)
    assert B % B_blk == 0, (B, B_blk)

    x_flat = x.reshape(B, Cin, HW)                       # free reshape, stays NCHW
    masks = _boundary_masks(H, W)

    kernel = functools.partial(_basic_block_kernel, H=H, W=W, B_blk=B_blk,
                               Cin=Cin, Cout=Cout, has_downsample=has_ds)
    const = lambda shape: pl.BlockSpec(shape, lambda b: (0,) * len(shape))

    in_specs = [
        const((9, HW)),                                       # boundary masks (DMA once)
        pl.BlockSpec((B_blk, Cin, HW), lambda b: (b, 0, 0)),  # input images
        const((Cout, 9 * Cin)),                               # fused conv1 weights
        const((Cout, 1)),                                     # bn1 bias
        const((Cout, 9 * Cout)),                              # fused conv2 weights
        const((Cout, 1)),                                     # bn2 (+ bnD) bias
    ]
    operands = [masks, x_flat, params["w1"], params["b1"], params["w2"], params["b2"]]
    if has_ds:
        in_specs.append(const((Cout, Cin)))                   # 1x1 downsample weights
        operands.append(params["wd"])

    out_flat = pl.pallas_call(
        kernel,
        out_shape=jax.ShapeDtypeStruct((B, Cout, HW), jnp.float32),
        grid_spec=pltpu.PrefetchScalarGridSpec(
            num_scalar_prefetch=0,
            grid=(B // B_blk,),
            in_specs=in_specs,
            out_specs=pl.BlockSpec((B_blk, Cout, HW), lambda b: (b, 0, 0)),
            scratch_shapes=[pltpu.VMEM((9 * Cin, HW), jnp.float32),
                            pltpu.VMEM((9 * Cout, HW), jnp.float32)],
        ),
        compiler_params=pltpu.CompilerParams(
            dimension_semantics=("parallel",)),
    )(*operands)

    return out_flat.reshape(B, Cout, H, W)               # free reshape (already NCHW order)


def _fold_bn(gamma, beta, mean, var, eps=1e-5):
    scale = gamma / jnp.sqrt(var + eps)
    bias = beta - mean * scale
    return scale, bias


def prepare_params(raw):
    """Fold inference-mode BN into conv weights / per-channel biases and lay the 3x3
    weights out as (Cout, 9*Cin) fused-tap matrices (column index = tap*Cin + cin,
    row-major over the 3x3 window — matching the kernel's stacked-tap scratch)."""
    w1 = raw["w1_oihw"]                                  # (O, I, 3, 3)
    w2 = raw["w2_oihw"]                                  # (O, O, 3, 3)
    Cout, Cin = w1.shape[0], w1.shape[1]

    s1, b1 = _fold_bn(*raw["bn1"])
    s2, b2 = _fold_bn(*raw["bn2"])
    w1_f = jnp.transpose(w1 * s1[:, None, None, None], (0, 2, 3, 1)).reshape(Cout, 9 * Cin)
    w2_f = jnp.transpose(w2 * s2[:, None, None, None], (0, 2, 3, 1)).reshape(Cout, 9 * Cout)

    params = {"w1": w1_f, "b1": b1.reshape(Cout, 1), "w2": w2_f,
              "has_downsample": raw["has_downsample"]}
    if raw["has_downsample"]:
        sd, bd = _fold_bn(*raw["bnd"])
        params["wd"] = raw["wd_oihw"][:, :, 0, 0] * sd[:, None]      # (O, I)
        params["b2"] = (b2 + bd).reshape(Cout, 1)    # single post-residual bias
    else:
        params["b2"] = b2.reshape(Cout, 1)
    return params


def make_params(key, in_channels, out_channels, stride=1):
    """Deterministic synthetic parameters matching BasicBlock.__init__ shapes
    (PyTorch OIHW conv weights + BN (gamma, beta, running_mean, running_var))."""
    assert stride == 1, "TODO(synk): stride != 1 not supported by the Pallas kernel"
    ks = jax.random.split(key, 6)
    w1 = 0.1 * jax.random.normal(ks[0], (out_channels, in_channels, 3, 3), jnp.float32)
    w2 = 0.1 * jax.random.normal(ks[1], (out_channels, out_channels, 3, 3), jnp.float32)

    def bn_params(k):
        k1, k2, k3, k4 = jax.random.split(k, 4)
        gamma = 1.0 + 0.1 * jax.random.normal(k1, (out_channels,), jnp.float32)
        beta = 0.1 * jax.random.normal(k2, (out_channels,), jnp.float32)
        mean = 0.1 * jax.random.normal(k3, (out_channels,), jnp.float32)
        var = jax.random.uniform(k4, (out_channels,), jnp.float32, minval=0.5, maxval=1.5)
        return (gamma, beta, mean, var)

    has_ds = (stride != 1) or (in_channels != out_channels)
    raw = {"w1_oihw": w1, "w2_oihw": w2,
           "bn1": bn_params(ks[3]), "bn2": bn_params(ks[4]),
           "has_downsample": has_ds}
    if has_ds:
        raw["wd_oihw"] = 0.1 * jax.random.normal(
            ks[2], (out_channels, in_channels, 1, 1), jnp.float32)
        raw["bnd"] = bn_params(ks[5])
    return raw


def reference_forward(x_nchw, raw, eps=1e-5):
    """Pure-JAX NCHW reference of BasicBlock.forward (inference-mode BN)."""
    dn = ("NCHW", "OIHW", "NCHW")

    def conv(x, w, pad):
        return jax.lax.conv_general_dilated(
            x, w, window_strides=(1, 1), padding=pad, dimension_numbers=dn)

    def bn(x, p):
        gamma, beta, mean, var = p
        s = gamma / jnp.sqrt(var + eps)
        b = beta - mean * s
        return x * s.reshape(1, -1, 1, 1) + b.reshape(1, -1, 1, 1)

    out = jax.nn.relu(bn(conv(x_nchw, raw["w1_oihw"], ((1, 1), (1, 1))), raw["bn1"]))
    out = bn(conv(out, raw["w2_oihw"], ((1, 1), (1, 1))), raw["bn2"])
    if raw["has_downsample"]:
        sc = bn(conv(x_nchw, raw["wd_oihw"], ((0, 0), (0, 0))), raw["bnd"])
    else:
        sc = x_nchw
    return jax.nn.relu(out + sc)


if __name__ == "__main__":
    key = jax.random.PRNGKey(0)
    kx, kp, kx2, kp2 = jax.random.split(key, 4)

    # Case 1: Cin != Cout -> 1x1-conv + BN downsample shortcut (B=2 -> 1 image/step).
    B, Cin, Cout, H, W = 2, 4, 8, 16, 16
    x = jax.random.normal(kx, (B, Cin, H, W), jnp.float32)
    raw = make_params(kp, Cin, Cout)
    out = jax.block_until_ready(basic_block_forward(x, prepare_params(raw)))
    ref = jax.block_until_ready(reference_forward(x, raw))
    assert out.shape == (B, Cout, H, W), out.shape
    assert jnp.allclose(out, ref, atol=1e-3, rtol=1e-3), float(jnp.max(jnp.abs(out - ref)))

    # Case 2: Cin == Cout, identity shortcut, B=4 -> batch-blocked (2 images/grid step).
    B2 = 4
    x2 = jax.random.normal(kx2, (B2, Cout, H, W), jnp.float32)
    raw2 = make_params(kp2, Cout, Cout)
    out2 = jax.block_until_ready(basic_block_forward(x2, prepare_params(raw2)))
    ref2 = jax.block_until_ready(reference_forward(x2, raw2))
    assert out2.shape == (B2, Cout, H, W), out2.shape
    assert jnp.allclose(out2, ref2, atol=1e-3, rtol=1e-3), float(jnp.max(jnp.abs(out2 - ref2)))

    print("KERNEL_OK")
</pallas_src>

<mosaic_0001>
module attributes {stable_mosaic.version = 11 : i64} {
  func.func @_basic_block_kernel(%arg0: i32, %arg1: memref<9x256xf32, #tpu.memory_space<vmem>>, %arg2: memref<1x4x256xf32, #tpu.memory_space<vmem>>, %arg3: memref<8x36xf32, #tpu.memory_space<vmem>>, %arg4: memref<8x1xf32, #tpu.memory_space<vmem>>, %arg5: memref<8x72xf32, #tpu.memory_space<vmem>>, %arg6: memref<8x1xf32, #tpu.memory_space<vmem>>, %arg7: memref<8x4xf32, #tpu.memory_space<vmem>>, %arg8: memref<1x8x256xf32, #tpu.memory_space<vmem>>, %arg9: memref<36x256xf32, #tpu.memory_space<vmem>>, %arg10: memref<72x256xf32, #tpu.memory_space<vmem>>) attributes {dimension_semantics = [#tpu.dimension_semantics<parallel>], iteration_bounds = array<i64: 2>, scalar_prefetch = 0 : i64, scratch_operands = 2 : i64, tpu.core_type = #tpu.core_type<tc>, window_params = [{pipeline_mode = #tpu.pipeline_mode<synchronous>, transform_indices = @transform_0, window_bounds = array<i64: 9, 256>}, {transform_indices = @transform_1, window_bounds = array<i64: 1, 4, 256>}, {pipeline_mode = #tpu.pipeline_mode<synchronous>, transform_indices = @transform_2, window_bounds = array<i64: 8, 36>}, {pipeline_mode = #tpu.pipeline_mode<synchronous>, transform_indices = @transform_3, window_bounds = array<i64: 8, 1>}, {pipeline_mode = #tpu.pipeline_mode<synchronous>, transform_indices = @transform_4, window_bounds = array<i64: 8, 72>}, {pipeline_mode = #tpu.pipeline_mode<synchronous>, transform_indices = @transform_5, window_bounds = array<i64: 8, 1>}, {pipeline_mode = #tpu.pipeline_mode<synchronous>, transform_indices = @transform_6, window_bounds = array<i64: 8, 4>}, {transform_indices = @transform_7, window_bounds = array<i64: 1, 8, 256>}]} {
    %c0 = arith.constant 0 : index
    %c0_0 = arith.constant 0 : index
    %0 = vector.load %arg3[%c0, %c0_0] : memref<8x36xf32, #tpu.memory_space<vmem>>, vector<8x36xf32>
    %c0_1 = arith.constant 0 : index
    %c0_2 = arith.constant 0 : index
    %1 = vector.load %arg5[%c0_1, %c0_2] : memref<8x72xf32, #tpu.memory_space<vmem>>, vector<8x72xf32>
    %c0_3 = arith.constant 0 : index
    %c0_4 = arith.constant 0 : index
    %2 = vector.load %arg4[%c0_3, %c0_4] : memref<8x1xf32, #tpu.memory_space<vmem>>, vector<8x1xf32>
    %c0_5 = arith.constant 0 : index
    %c0_6 = arith.constant 0 : index
    %3 = vector.load %arg6[%c0_5, %c0_6] : memref<8x1xf32, #tpu.memory_space<vmem>>, vector<8x1xf32>
    %c0_7 = arith.constant 0 : index
    %c0_8 = arith.constant 0 : index
    %4 = vector.load %arg7[%c0_7, %c0_8] : memref<8x4xf32, #tpu.memory_space<vmem>>, vector<8x4xf32>
    %c0_9 = arith.constant 0 : index
    %c0_10 = arith.constant 0 : index
    %5 = vector.load %arg1[%c0_9, %c0_10] : memref<9x256xf32, #tpu.memory_space<vmem>>, vector<1x256xf32>
    %c1 = arith.constant 1 : index
    %c0_11 = arith.constant 0 : index
    %6 = vector.load %arg1[%c1, %c0_11] : memref<9x256xf32, #tpu.memory_space<vmem>>, vector<1x256xf32>
    %c2 = arith.constant 2 : index
    %c0_12 = arith.constant 0 : index
    %7 = vector.load %arg1[%c2, %c0_12] : memref<9x256xf32, #tpu.memory_space<vmem>>, vector<1x256xf32>
    %c3 = arith.constant 3 : index
    %c0_13 = arith.constant 0 : index
    %8 = vector.load %arg1[%c3, %c0_13] : memref<9x256xf32, #tpu.memory_space<vmem>>, vector<1x256xf32>
    %c5 = arith.constant 5 : index
    %c0_14 = arith.constant 0 : index
    %9 = vector.load %arg1[%c5, %c0_14] : memref<9x256xf32, #tpu.memory_space<vmem>>, vector<1x256xf32>
    %c6 = arith.constant 6 : index
    %c0_15 = arith.constant 0 : index
    %10 = vector.load %arg1[%c6, %c0_15] : memref<9x256xf32, #tpu.memory_space<vmem>>, vector<1x256xf32>
    %c7 = arith.constant 7 : index
    %c0_16 = arith.constant 0 : index
    %11 = vector.load %arg1[%c7, %c0_16] : memref<9x256xf32, #tpu.memory_space<vmem>>, vector<1x256xf32>
    %c8 = arith.constant 8 : index
    %c0_17 = arith.constant 0 : index
    %12 = vector.load %arg1[%c8, %c0_17] : memref<9x256xf32, #tpu.memory_space<vmem>>, vector<1x256xf32>
    %c0_18 = arith.constant 0 : index
    %c0_19 = arith.constant 0 : index
    %c0_20 = arith.constant 0 : index
    %13 = vector.load %arg2[%c0_18, %c0_19, %c0_20] : memref<1x4x256xf32, #tpu.memory_space<vmem>>, vector<1x4x256xf32>
    %14 = vector.shape_cast %13 : vector<1x4x256xf32> to vector<4x256xf32>
    %c17_i32 = arith.constant 17 : i32
    %15 = tpu.dynamic_rotate %14 by %c17_i32 dim 1 : vector<4x256xf32>, i32 -> vector<4x256xf32>
    %16 = vector.broadcast %5 : vector<1x256xf32> to vector<4x256xf32>
    %17 = arith.mulf %15, %16 : vector<4x256xf32>
    %c0_21 = arith.constant 0 : index
    %c0_22 = arith.constant 0 : index
    %18 = vector.load %arg9[%c0_21, %c0_22] : memref<36x256xf32, #tpu.memory_space<vmem>>, vector<4x256xf32>
    tpu.vector_store %arg9[%c0_21, %c0_22], %17 {strides = array<i32>} : memref<36x256xf32, #tpu.memory_space<vmem>>, vector<4x256xf32>,
    %c16_i32 = arith.constant 16 : i32
    %19 = tpu.dynamic_rotate %14 by %c16_i32 dim 1 : vector<4x256xf32>, i32 -> vector<4x256xf32>
    %20 = vector.broadcast %6 : vector<1x256xf32> to vector<4x256xf32>
    %21 = arith.mulf %19, %20 : vector<4x256xf32>
    %c4 = arith.constant 4 : index
    %c0_23 = arith.constant 0 : index
    %22 = vector.load %arg9[%c4, %c0_23] : memref<36x256xf32, #tpu.memory_space<vmem>>, vector<4x256xf32>
    tpu.vector_store %arg9[%c4, %c0_23], %21 {strides = array<i32>} : memref<36x256xf32, #tpu.memory_space<vmem>>, vector<4x256xf32>,
    %c15_i32 = arith.constant 15 : i32
    %23 = tpu.dynamic_rotate %14 by %c15_i32 dim 1 : vector<4x256xf32>, i32 -> vector<4x256xf32>
    %24 = vector.broadcast %7 : vector<1x256xf32> to vector<4x256xf32>
    %25 = arith.mulf %23, %24 : vector<4x256xf32>
    %c8_24 = arith.constant 8 : index
    %c0_25 = arith.constant 0 : index
    %26 = vector.load %arg9[%c8_24, %c0_25] : memref<36x256xf32, #tpu.memory_space<vmem>>, vector<4x256xf32>
    tpu.vector_store %arg9[%c8_24, %c0_25], %25 {strides = array<i32>} : memref<36x256xf32, #tpu.memory_space<vmem>>, vector<4x256xf32>,
    %c1_i32 = arith.constant 1 : i32
    %27 = tpu.dynamic_rotate %14 by %c1_i32 dim 1 : vector<4x256xf32>, i32 -> vector<4x256xf32>
    %28 = vector.broadcast %8 : vector<1x256xf32> to vector<4x256xf32>
    %29 = arith.mulf %27, %28 : vector<4x256xf32>
    %c12 = arith.constant 12 : index
    %c0_26 = arith.constant 0 : index
    %30 = vector.load %arg9[%c12, %c0_26] : memref<36x256xf32, #tpu.memory_space<vmem>>, vector<4x256xf32>
    tpu.vector_store %arg9[%c12, %c0_26], %29 {strides = array<i32>} : memref<36x256xf32, #tpu.memory_space<vmem>>, vector<4x256xf32>,
    %c16 = arith.constant 16 : index
    %c0_27 = arith.constant 0 : index
    %31 = vector.load %arg9[%c16, %c0_27] : memref<36x256xf32, #tpu.memory_space<vmem>>, vector<4x256xf32>
    tpu.vector_store %arg9[%c16, %c0_27], %14 {strides = array<i32>} : memref<36x256xf32, #tpu.memory_space<vmem>>, vector<4x256xf32>,
    %c255_i32 = arith.constant 255 : i32
    %32 = tpu.dynamic_rotate %14 by %c255_i32 dim 1 : vector<4x256xf32>, i32 -> vector<4x256xf32>
    %33 = vector.broadcast %9 : vector<1x256xf32> to vector<4x256xf32>
    %34 = arith.mulf %32, %33 : vector<4x256xf32>
    %c20 = arith.constant 20 : index
    %c0_28 = arith.constant 0 : index
    %35 = vector.load %arg9[%c20, %c0_28] : memref<36x256xf32, #tpu.memory_space<vmem>>, vector<4x256xf32>
    tpu.vector_store %arg9[%c20, %c0_28], %34 {strides = array<i32>} : memref<36x256xf32, #tpu.memory_space<vmem>>, vector<4x256xf32>,
    %c241_i32 = arith.constant 241 : i32
    %36 = tpu.dynamic_rotate %14 by %c241_i32 dim 1 : vector<4x256xf32>, i32 -> vector<4x256xf32>
    %37 = vector.broadcast %10 : vector<1x256xf32> to vector<4x256xf32>
    %38 = arith.mulf %36, %37 : vector<4x256xf32>
    %c24 = arith.constant 24 : index
    %c0_29 = arith.constant 0 : index
    %39 = vector.load %arg9[%c24, %c0_29] : memref<36x256xf32, #tpu.memory_space<vmem>>, vector<4x256xf32>
    tpu.vector_store %arg9[%c24, %c0_29], %38 {strides = array<i32>} : memref<36x256xf32, #tpu.memory_space<vmem>>, vector<4x256xf32>,
    %c240_i32 = arith.constant 240 : i32
    %40 = tpu.dynamic_rotate %14 by %c240_i32 dim 1 : vector<4x256xf32>, i32 -> vector<4x256xf32>
    %41 = vector.broadcast %11 : vector<1x256xf32> to vector<4x256xf32>
    %42 = arith.mulf %40, %41 : vector<4x256xf32>
    %c28 = arith.constant 28 : index
    %c0_30 = arith.constant 0 : index
    %43 = vector.load %arg9[%c28, %c0_30] : memref<36x256xf32, #tpu.memory_space<vmem>>, vector<4x256xf32>
    tpu.vector_store %arg9[%c28, %c0_30], %42 {strides = array<i32>} : memref<36x256xf32, #tpu.memory_space<vmem>>, vector<4x256xf32>,
    %c239_i32 = arith.constant 239 : i32
    %44 = tpu.dynamic_rotate %14 by %c239_i32 dim 1 : vector<4x256xf32>, i32 -> vector<4x256xf32>
    %45 = vector.broadcast %12 : vector<1x256xf32> to vector<4x256xf32>
    %46 = arith.mulf %44, %45 : vector<4x256xf32>
    %c32 = arith.constant 32 : index
    %c0_31 = arith.constant 0 : index
    %47 = vector.load %arg9[%c32, %c0_31] : memref<36x256xf32, #tpu.memory_space<vmem>>, vector<4x256xf32>
    tpu.vector_store %arg9[%c32, %c0_31], %46 {strides = array<i32>} : memref<36x256xf32, #tpu.memory_space<vmem>>, vector<4x256xf32>,
    %c0_32 = arith.constant 0 : index
    %c0_33 = arith.constant 0 : index
    %48 = vector.load %arg9[%c0_32, %c0_33] : memref<36x256xf32, #tpu.memory_space<vmem>>, vector<36x256xf32>
    %cst = arith.constant dense<0.000000e+00> : vector<8x256xf32>
    %49 = tpu.matmul %0, %48, %cst {dimension_numbers = #tpu.dot_dimension_numbers<[1], [0], [0], [1], [0, 0, 1, 1], [], []>} : vector<8x36xf32>, vector<36x256xf32>, vector<8x256xf32> -> vector<8x256xf32>
    %50 = vector.broadcast %2 : vector<8x1xf32> to vector<8x256xf32>
    %51 = arith.addf %49, %50 : vector<8x256xf32>
    %cst_34 = arith.constant 0.000000e+00 : f32
    %52 = vector.broadcast %cst_34 : f32 to vector<8x256xf32>
    %53 = arith.maximumf %51, %52 : vector<8x256xf32>
    %c17_i32_35 = arith.constant 17 : i32
    %54 = tpu.dynamic_rotate %53 by %c17_i32_35 dim 1 : vector<8x256xf32>, i32 -> vector<8x256xf32>
    %55 = vector.broadcast %5 : vector<1x256xf32> to vector<8x256xf32>
    %56 = arith.mulf %54, %55 : vector<8x256xf32>
    %c0_36 = arith.constant 0 : index
    %c0_37 = arith.constant 0 : index
    %57 = vector.load %arg10[%c0_36, %c0_37] : memref<72x256xf32, #tpu.memory_space<vmem>>, vector<8x256xf32>
    tpu.vector_store %arg10[%c0_36, %c0_37], %56 {strides = array<i32>} : memref<72x256xf32, #tpu.memory_space<vmem>>, vector<8x256xf32>,
    %c16_i32_38 = arith.constant 16 : i32
    %58 = tpu.dynamic_rotate %53 by %c16_i32_38 dim 1 : vector<8x256xf32>, i32 -> vector<8x256xf32>
    %59 = vector.broadcast %6 : vector<1x256xf32> to vector<8x256xf32>
    %60 = arith.mulf %58, %59 : vector<8x256xf32>
    %c8_39 = arith.constant 8 : index
    %c0_40 = arith.constant 0 : index
    %61 = vector.load %arg10[%c8_39, %c0_40] : memref<72x256xf32, #tpu.memory_space<vmem>>, vector<8x256xf32>
    tpu.vector_store %arg10[%c8_39, %c0_40], %60 {strides = array<i32>} : memref<72x256xf32, #tpu.memory_space<vmem>>, vector<8x256xf32>,
    %c15_i32_41 = arith.constant 15 : i32
    %62 = tpu.dynamic_rotate %53 by %c15_i32_41 dim 1 : vector<8x256xf32>, i32 -> vector<8x256xf32>
    %63 = vector.broadcast %7 : vector<1x256xf32> to vector<8x256xf32>
    %64 = arith.mulf %62, %63 : vector<8x256xf32>
    %c16_42 = arith.constant 16 : index
    %c0_43 = arith.constant 0 : index
    %65 = vector.load %arg10[%c16_42, %c0_43] : memref<72x256xf32, #tpu.memory_space<vmem>>, vector<8x256xf32>
    tpu.vector_store %arg10[%c16_42, %c0_43], %64 {strides = array<i32>} : memref<72x256xf32, #tpu.memory_space<vmem>>, vector<8x256xf32>,
    %c1_i32_44 = arith.constant 1 : i32
    %66 = tpu.dynamic_rotate %53 by %c1_i32_44 dim 1 : vector<8x256xf32>, i32 -> vector<8x256xf32>
    %67 = vector.broadcast %8 : vector<1x256xf32> to vector<8x256xf32>
    %68 = arith.mulf %66, %67 : vector<8x256xf32>
    %c24_45 = arith.constant 24 : index
    %c0_46 = arith.constant 0 : index
    %69 = vector.load %arg10[%c24_45, %c0_46] : memref<72x256xf32, #tpu.memory_space<vmem>>, vector<8x256xf32>
    tpu.vector_store %arg10[%c24_45, %c0_46], %68 {strides = array<i32>} : memref<72x256xf32, #tpu.memory_space<vmem>>, vector<8x256xf32>,
    %c32_47 = arith.constant 32 : index
    %c0_48 = arith.constant 0 : index
    %70 = vector.load %arg10[%c32_47, %c0_48] : memref<72x256xf32, #tpu.memory_space<vmem>>, vector<8x256xf32>
    tpu.vector_store %arg10[%c32_47, %c0_48], %53 {strides = array<i32>} : memref<72x256xf32, #tpu.memory_space<vmem>>, vector<8x256xf32>,
    %c255_i32_49 = arith.constant 255 : i32
    %71 = tpu.dynamic_rotate %53 by %c255_i32_49 dim 1 : vector<8x256xf32>, i32 -> vector<8x256xf32>
    %72 = vector.broadcast %9 : vector<1x256xf32> to vector<8x256xf32>
    %73 = arith.mulf %71, %72 : vector<8x256xf32>
    %c40 = arith.constant 40 : index
    %c0_50 = arith.constant 0 : index
    %74 = vector.load %arg10[%c40, %c0_50] : memref<72x256xf32, #tpu.memory_space<vmem>>, vector<8x256xf32>
    tpu.vector_store %arg10[%c40, %c0_50], %73 {strides = array<i32>} : memref<72x256xf32, #tpu.memory_space<vmem>>, vector<8x256xf32>,
    %c241_i32_51 = arith.constant 241 : i32
    %75 = tpu.dynamic_rotate %53 by %c241_i32_51 dim 1 : vector<8x256xf32>, i32 -> vector<8x256xf32>
    %76 = vector.broadcast %10 : vector<1x256xf32> to vector<8x256xf32>
    %77 = arith.mulf %75, %76 : vector<8x256xf32>
    %c48 = arith.constant 48 : index
    %c0_52 = arith.constant 0 : index
    %78 = vector.load %arg10[%c48, %c0_52] : memref<72x256xf32, #tpu.memory_space<vmem>>, vector<8x256xf32>
    tpu.vector_store %arg10[%c48, %c0_52], %77 {strides = array<i32>} : memref<72x256xf32, #tpu.memory_space<vmem>>, vector<8x256xf32>,
    %c240_i32_53 = arith.constant 240 : i32
    %79 = tpu.dynamic_rotate %53 by %c240_i32_53 dim 1 : vector<8x256xf32>, i32 -> vector<8x256xf32>
    %80 = vector.broadcast %11 : vector<1x256xf32> to vector<8x256xf32>
    %81 = arith.mulf %79, %80 : vector<8x256xf32>
    %c56 = arith.constant 56 : index
    %c0_54 = arith.constant 0 : index
    %82 = vector.load %arg10[%c56, %c0_54] : memref<72x256xf32, #tpu.memory_space<vmem>>, vector<8x256xf32>
    tpu.vector_store %arg10[%c56, %c0_54], %81 {strides = array<i32>} : memref<72x256xf32, #tpu.memory_space<vmem>>, vector<8x256xf32>,
    %c239_i32_55 = arith.constant 239 : i32
    %83 = tpu.dynamic_rotate %53 by %c239_i32_55 dim 1 : vector<8x256xf32>, i32 -> vector<8x256xf32>
    %84 = vector.broadcast %12 : vector<1x256xf32> to vector<8x256xf32>
    %85 = arith.mulf %83, %84 : vector<8x256xf32>
    %c64 = arith.constant 64 : index
    %c0_56 = arith.constant 0 : index
    %86 = vector.load %arg10[%c64, %c0_56] : memref<72x256xf32, #tpu.memory_space<vmem>>, vector<8x256xf32>
    tpu.vector_store %arg10[%c64, %c0_56], %85 {strides = array<i32>} : memref<72x256xf32, #tpu.memory_space<vmem>>, vector<8x256xf32>,
    %c0_57 = arith.constant 0 : index
    %c0_58 = arith.constant 0 : index
    %87 = vector.load %arg10[%c0_57, %c0_58] : memref<72x256xf32, #tpu.memory_space<vmem>>, vector<72x256xf32>
    %cst_59 = arith.constant dense<0.000000e+00> : vector<8x256xf32>
    %88 = tpu.matmul %1, %87, %cst_59 {dimension_numbers = #tpu.dot_dimension_numbers<[1], [0], [0], [1], [0, 0, 1, 1], [], []>} : vector<8x72xf32>, vector<72x256xf32>, vector<8x256xf32> -> vector<8x256xf32>
    %cst_60 = arith.constant dense<0.000000e+00> : vector<8x256xf32>
    %89 = tpu.matmul %4, %14, %cst_60 {dimension_numbers = #tpu.dot_dimension_numbers<[1], [0], [0], [1], [0, 0, 1, 1], [], []>} : vector<8x4xf32>, vector<4x256xf32>, vector<8x256xf32> -> vector<8x256xf32>
    %90 = arith.addf %88, %89 : vector<8x256xf32>
    %91 = vector.broadcast %3 : vector<8x1xf32> to vector<8x256xf32>
    %92 = arith.addf %90, %91 : vector<8x256xf32>
    %cst_61 = arith.constant 0.000000e+00 : f32
    %93 = vector.broadcast %cst_61 : f32 to vector<8x256xf32>
    %94 = arith.maximumf %92, %93 : vector<8x256xf32>
    %c0_62 = arith.constant 0 : index
    %c0_63 = arith.constant 0 : index
    %c0_64 = arith.constant 0 : index
    %95 = vector.load %arg8[%c0_62, %c0_63, %c0_64] : memref<1x8x256xf32, #tpu.memory_space<vmem>>, vector<1x8x256xf32>
    %96 = vector.shape_cast %95 : vector<1x8x256xf32> to vector<8x256xf32>
    %97 = vector.shape_cast %94 : vector<8x256xf32> to vector<1x8x256xf32>
    tpu.vector_store %arg8[%c0_62, %c0_63, %c0_64], %97 {strides = array<i32>} : memref<1x8x256xf32, #tpu.memory_space<vmem>>, vector<1x8x256xf32>,
    return
  }
  func.func @transform_0(%arg0: i32) -> (i32, i32) {
    %c0_i32 = arith.constant 0 : i32
    %c0_i32_0 = arith.constant 0 : i32
    %c0_i32_1 = arith.constant 0 : i32
    return %c0_i32, %c0_i32_0 : i32, i32
  }
  func.func @transform_1(%arg0: i32) -> (i32, i32, i32) {
    %c0_i32 = arith.constant 0 : i32
    %c0_i32_0 = arith.constant 0 : i32
    %c0_i32_1 = arith.constant 0 : i32
    return %arg0, %c0_i32, %c0_i32_0 : i32, i32, i32
  }
  func.func @transform_2(%arg0: i32) -> (i32, i32) {
    %c0_i32 = arith.constant 0 : i32
    %c0_i32_0 = arith.constant 0 : i32
    %c0_i32_1 = arith.constant 0 : i32
    return %c0_i32, %c0_i32_0 : i32, i32
  }
  func.func @transform_3(%arg0: i32) -> (i32, i32) {
    %c0_i32 = arith.constant 0 : i32
    %c0_i32_0 = arith.constant 0 : i32
    %c0_i32_1 = arith.constant 0 : i32
    return %c0_i32, %c0_i32_0 : i32, i32
  }
  func.func @transform_4(%arg0: i32) -> (i32, i32) {
    %c0_i32 = arith.constant 0 : i32
    %c0_i32_0 = arith.constant 0 : i32
    %c0_i32_1 = arith.constant 0 : i32
    return %c0_i32, %c0_i32_0 : i32, i32
  }
  func.func @transform_5(%arg0: i32) -> (i32, i32) {
    %c0_i32 = arith.constant 0 : i32
    %c0_i32_0 = arith.constant 0 : i32
    %c0_i32_1 = arith.constant 0 : i32
    return %c0_i32, %c0_i32_0 : i32, i32
  }
  func.func @transform_6(%arg0: i32) -> (i32, i32) {
    %c0_i32 = arith.constant 0 : i32
    %c0_i32_0 = arith.constant 0 : i32
    %c0_i32_1 = arith.constant 0 : i32
    return %c0_i32, %c0_i32_0 : i32, i32
  }
  func.func @transform_7(%arg0: i32) -> (i32, i32, i32) {
    %c0_i32 = arith.constant 0 : i32
    %c0_i32_0 = arith.constant 0 : i32
    %c0_i32_1 = arith.constant 0 : i32
    return %arg0, %c0_i32, %c0_i32_0 : i32, i32, i32
  }
}

</mosaic_0001>

<bundles_post_ra>
// kernel: tpu_custom_call.1
= control target key start
LH: loop header
LB: loop body
LE: loop exit
PB: predicated region body
PF: predicated region fallthrough
CT: control target
= control target key end

     0   :  { %12 = vsyncpa [#allocation5], 0  ;;  %s1624_s0 = inlined_call_operand.hbm [shape: f32[9,256], index: 0, kind: input, shape index: {}]   ;;  %s1625_s1 = inlined_call_operand.vmem [shape: f32[2,4,256], index: 1, kind: input, shape index: {}]   ;;  %s1626_s2 = inlined_call_operand.vmem [shape: f32[8,36], index: 2, kind: input, shape index: {}]   ;;  %s1627_s3 = inlined_call_operand.vmem [shape: f32[8,1], index: 3, kind: input, shape index: {}]   ;;  %s1628_s4 = inlined_call_operand.vmem [shape: f32[8,72], index: 4, kind: input, shape index: {}]   ;;  %s1629_s5 = inlined_call_operand.vmem [shape: f32[8,1], index: 5, kind: input, shape index: {}]   ;;  %s1630_s6 = inlined_call_operand.vmem [shape: f32[8,4], index: 6, kind: input, shape index: {}]   ;;  %s1631_s7 = inlined_call_operand.hbm [shape: f32[2,8,256], index: 7, kind: output, shape index: {}]  }
   0x1   :  { %13 = vsyncpa [#allocation6], 0 }
   0x2   :  { %15 = vsyncpa [#allocation6 + $0x1], 0  ;;  %s1233_s24 = smov 0   ;;  %s1235_s25 = smov 0  }
   0x3   :  { %s1237_s26 = smov 0   ;;  %s1239_s27 = smov 0  }
   0x4 LB: > { %s1254_s28 = sadd.s32 4294967295, %s1177_s27   ;;  %s970_s29 = sadd.s32 4294967294, %s1177_s27   ;;  %s1177_s27 = sphi %s1239_s27, %s1647_s27   ;;  %s1173_s26 = sphi %s1237_s26, %s1646_s26   ;;  %s1169_s25 = sphi %s1235_s25, %s1645_s25   ;;  %s1165_s24 = sphi %s1233_s24, %s1644_s24  }
   0x5   : > { %s1258_s30 = sadd.s32 1, %s1177_s27   ;;  %s180_s8 = sadd.s32 1, %s1173_s26 }
   0x6   : > { %s177_s9 = ssub.s32 %s1177_s27, %s1258_s30  ;;  %p190_p0 = scmp.ne.s32.totalorder %s1173_s26, %s1169_s25 }
   0x7   : > { %p178_p1 = scmp.eq.s32.totalorder %s177_s9, 0  ;;  %p191_p2 = scmp.eq.s32.totalorder %s1254_s28, 1 }
   0x8   : > { %p196_p3 = scmp.ne.s32.totalorder %s1169_s25, %s1165_s24  ;;  %p197_p4 = scmp.eq.s32.totalorder %s970_s29, 1 }
   0x9   : > { %s1269_s10 = scalar_select %p178_p1, %s1173_s26, %s180_s8  }
   0xa   : > { %p1271_p5 = por %p191_p2, %p190_p0  ;;  %p1275_p6 = por %p197_p4, %p196_p3 }
   0xb   : > { %p971_p7 = scmp.ge.s32.totalorder %s1177_s27, 1  ;;  %p204_p8 = scmp.lt.s32.totalorder %s1177_s27, 3 }
   0xc   : > { %s1635_s11 = scalar_select %p1271_p5, 1, 0 }
   0xd   : > { %s1636_s12 = scalar_select %p1275_p6, 1, 0 }
   0xe   : > { %p1632_p9 = scmp.eq.s32.totalorder %s1254_s28, 0  ;;  %p1282_p10 = pnand %p971_p7, %p204_p8 }
   0xf   : > { %s1179_s14 = smov [#allocation4]   ;;  %s1083_s19 = scalar_lea.hbm %s1624_s0, 512 }
  0x10   : > { %s1637_s13 = scalar_select %p1282_p10, 1, 0 }
  0x11   : > { %s216_s15 = sshll.u32 %s1179_s14, 4  ;;  %p1025_p11 = pneg %p1282_p10  ;;  %s217_s15 = int_to_ptr.vmem [resolvable:$true] %s216_s15 }
  0x12   : > { %p1084_p13 = scmp.ne.s32.totalorder %s1624_s0, %s1083_s19  ;;  %p1090_p3 = scmp.lt.u32.totalorder %s1083_s19, %s1624_s0 }
  0x13   : > { %p1290_p12 = pnand %p1632_p9, %p1025_p11 }
  0x15   : > { %p1085_p0 = pneg %p1290_p12 }
  0x17   : > { %p1086_p1 = pnand %p1085_p0, %p1084_p13 }
  0x19   : > { %p1087_p2 = pneg %p1086_p1 }
  0x1b   : > { %p1092_p4 = pnand %p1090_p3, %p1087_p2 }
  0x1d   : > { %1095 = shalt.err (!%p1092_p4)
}
  0x1e   : > { %s1096_s29 = scalar_lea.vmem %s217_s15, 512  ;;  %p1104_p9 = scmp.lt.s32.totalorder %s217_s15, %s217_s15 }
  0x1f   : > { %p1097_p7 = scmp.ne.s32.totalorder %s217_s15, %s1096_s29  ;;  %p1105_p6 = scmp.lt.s32.totalorder %s1096_s29, %s1096_s29 }
  0x21   : > { %p1099_p8 = pnand %p1097_p7, %p1085_p0  ;;  %p1106_p5 = por %p1105_p6, %p1104_p9 }
  0x23   : > { %p1100_p11 = pneg %p1099_p8 }
  0x25   : > { %p1107_p10 = pnand %p1106_p5, %p1100_p11 }
  0x27   : > { %1110 = shalt.err (!%p1107_p10)
}
  0x28   : > { %s1180_s8 = smov 256   ;;  %s1181_s9 = smov 16  }
  0x29   : > { %1028 = dma.hbm_to_vmem [thread:$0]  (!%p1290_p12), %s1624_s0, 512, %s217_s15, [#allocation5], %s1180_s8, %s1180_s8, %s1181_s9  }
  0x2a   : > { %p1639_p13 = scmp.ne.s32.totalorder %s1637_s13, 0 }
  0x2b   : > { %p1640_p1 = scmp.eq.s32.totalorder (!%p1639_p13), %s1254_s28, 0 }
  0x2c   : > { %255 = sbr.rel (%p1639_p13) target bundleno = 820 (0x334), region = 48 }
  0x33   : > { %1156 = dma.done.wait (%p1640_p1), [#allocation5], 512   ;;  %p1641_p0 = pmov %p1640_p1 }
  0x34   : > { %p287_p5 = scmp.lt.s32.totalorder %s1254_s28, 1  ;;  %s1182_s15 = smov 1   ;;  %v1190_v2 = vmov 0.0   ;;  %v294_v3 = vld [vmem:[%s1627_s3] sm:$0xff]  ;;  %v1191_v4 = vmov 0   ;;  %v320_v5 = vlaneseq  ;;  %vm539_vm8 = vcmask 1043456  }
  0x35   : > { %1158 = vsyncadd (%p1641_p0), [#allocation5], 4294966784  ;;  %s1183_s13 = smov 16   ;;  %s1184_s22 = smov 17   ;;  %610 = vmatprep.mubr.f32.mxu0 %v1190_v2  ;;  %866 = vmatprep.mubr.f32.mxu1 %v1190_v2  ;;  %vm535_vm9 = vcmask 293888   ;;  %vm719_vm10 = vcmask 31744  }
  0x36   : > { %s288_s18 = scalar_select %p287_p5, %s1254_s28, 1  ;;  %1081 = vset.pattern.permute.xlu0 %v1191_v4  ;;  %v327_v6 = vshrl.u32 %v320_v5, 7  ;;  %v1366_v7 = vand.u32 127, %v320_v5  ;;  %v303_v10 = vld [vmem:[#allocation4 + $0x3] ss:$8 sm:$0x3] }
  0x37   : > { %s1185_s23 = smov 15   ;;  %s1186_s29 = smov 127   ;;  %v297_v15 = vld [vmem:[#allocation4] ss:$8 sm:$0x3]  ;;  %vm798_vm11 = vcmask 588800  }
  0x38   : > { %s991_s19 = sshll.u32 %s288_s18, 3  ;;  %s1187_s8 = smov 112   ;;  %v1368_v8 = vsub.s32 0, %v327_v6  ;;  %v1370_v9 = vsub.s32 1, %v327_v6  ;;  %vm394_vm0 = vcmp.lt.s32.totalorder %v1366_v7, 1  ;;  %vm322_vm1 = vcmp.lt.s32.totalorder %v1366_v7, 17 }
  0x39   : > { %s291_s21 = scalar_lea.vmem %s1625_s1, %s991_s19  ;;  %s1188_s9 = smov 113   ;;  %v299_v16 = vld [vmem:[#allocation4 + $0x1] ss:$8 sm:$0x3]  ;;  %vm344_vm2 = vcmp.lt.s32.totalorder %v1366_v7, 16  ;;  %vm372_vm3 = vcmp.lt.s32.totalorder %v1366_v7, 15 }
  0x3a   : > { %v1321_v0 = vld [vmem:[%s291_s21] sm:$0xff]  ;;  %s1189_s14 = smov 111   ;;  %v1374_v13 = vrot.slane %v303_v10, %v1368_v8  ;;  %v1377_v14 = vrot.slane %v303_v10, %v1370_v9  ;;  %v1386_v21 = vrot.slane %v297_v15, %v1368_v8  ;;  %v1389_v22 = vrot.slane %v297_v15, %v1370_v9  ;;  %v301_v23 = vld [vmem:[#allocation4 + $0x2] ss:$8 sm:$0x3]  ;;  %p1642_p9 = scmp.ne.s32.totalorder %s1635_s11, 0 }
  0x3b   : > { %390 = vrot.lane.b32.xlu1 %v1321_v0, %s1182_s15  ;;  %418 = vst [vmem:[#allocation2 + $0x20] sm:$0xf] %v1321_v0  ;;  %340 = vrot.lane.b32.xlu0 %v1321_v0, %s1183_s13  ;;  %v1330_v1 = vcombine.high %v1321_v0, %v1321_v0  ;;  %v1394_v26 = vrot.slane %v299_v16, %v1368_v8  ;;  %v305_v42 = vld [vmem:[#allocation4 + $0x5] ss:$8 sm:$0x3]  ;;  %vm424_vm4 = vcmp.lt.s32.totalorder %v1366_v7, 127 }
  0x3c   : > { %v1397_v27 = vrot.slane %v299_v16, %v1370_v9  ;;  %v1401_v32 = vrot.slane %v301_v23, %v1368_v8  ;;  %v1404_v33 = vrot.slane %v301_v23, %v1370_v9  ;;  %v1426_v51 = vrot.slane %v305_v42, %v1368_v8  ;;  %v309_v53 = vld [vmem:[#allocation4 + $0x7] ss:$8 sm:$0x3]  ;;  %v307_v62 = vld [vmem:[#allocation4 + $0x6] ss:$8 sm:$0x3] }
  0x3d   : > { %419 = vst [vmem:[#allocation2 + $0x28] sm:$0xf] %v1330_v1  ;;  %v1429_v52 = vrot.slane %v305_v42, %v1370_v9  ;;  %vm474_vm5 = vcmp.lt.s32.totalorder %v1366_v7, 112  ;;  %v1439_v60 = vrot.slane %v309_v53, %v1368_v8  ;;  %v1442_v61 = vrot.slane %v309_v53, %v1370_v9 }
  0x3e   : > { %vm452_vm6 = vcmp.lt.s32.totalorder %v1366_v7, 113  ;;  %v1452_v15 = vrot.slane %v307_v62, %v1368_v8  ;;  %v1455_v16 = vrot.slane %v307_v62, %v1370_v9  ;;  %vm502_vm7 = vcmp.lt.s32.totalorder %v1366_v7, 111 }
  0x3f   : > { %316 = vrot.lane.b32.xlu0 %v1321_v0, %s1184_s22  ;;  %392 = vrot.lane.b32.xlu1 %v1330_v1, %s1182_s15 }
  0x43   : > { %318 = vrot.lane.b32.xlu1 %v1330_v1, %s1184_s22  ;;  %342 = vrot.lane.b32.xlu0 %v1330_v1, %s1183_s13 }
  0x47   : > { %370 = vrot.lane.b32.xlu1 %v1330_v1, %s1185_s23  ;;  %368 = vrot.lane.b32.xlu0 %v1321_v0, %s1185_s23 }
  0x4b   : > { %422 = vrot.lane.b32.xlu1 %v1330_v1, %s1186_s29  ;;  %420 = vrot.lane.b32.xlu0 %v1321_v0, %s1186_s29 }
  0x4f   : > { %472 = vrot.lane.b32.xlu1 %v1330_v1, %s1187_s8  ;;  %470 = vrot.lane.b32.xlu0 %v1321_v0, %s1187_s8 }
  0x53   : > { %450 = vrot.lane.b32.xlu1 %v1330_v1, %s1188_s9  ;;  %448 = vrot.lane.b32.xlu0 %v1321_v0, %s1188_s9 }
  0x57   : > { %500 = vrot.lane.b32.xlu1 %v1330_v1, %s1189_s14  ;;  %498 = vrot.lane.b32.xlu0 %v1321_v0, %s1189_s14 }
  0x5b   : > { %532 = vperm.xlu0 %1081, %v294_v3  }
  0xad   : > { %v391_v11 = vpop.permute.xlu1 %390  ;;  %v341_v12 = vpop.permute.xlu0 %340 }
  0xb1   : > { %v317_v17 = vpop.permute.xlu0 %316  ;;  %v393_v18 = vpop.permute.xlu1 %392 }
  0xb2   : > { %v395_v19 = vsel %vm394_vm0, %v391_v11, %v393_v18  ;;  %v396_v20 = vsel %vm394_vm0, %v393_v18, %v391_v11  ;;  %v311_v18 = vld [vmem:[#allocation4 + $0x10] ss:$8 sm:$0x3] }
  0xb3   : > { %v408_v24 = vmul.f32 %v1374_v13, %v396_v20  ;;  %v409_v25 = vmul.f32 %v1377_v14, %v395_v19 }
  0xb5   : > { %v412_v28 = vrot.slane %v408_v24, 4  ;;  %v413_v29 = vrot.slane %v409_v25, 4  ;;  %v319_v30 = vpop.permute.xlu1 %318  ;;  %v343_v31 = vpop.permute.xlu0 %342 }
  0xb6   : > { %v323_v34 = vsel %vm322_vm1, %v317_v17, %v319_v30  ;;  %v324_v35 = vsel %vm322_vm1, %v319_v30, %v317_v17  ;;  %v345_v36 = vsel %vm344_vm2, %v341_v12, %v343_v31  ;;  %v346_v37 = vsel %vm344_vm2, %v343_v31, %v341_v12 }
  0xb7   : > { %416 = vst [vmem:[#allocation2 + $0x10] sm:$0xf0] %v412_v28  ;;  %417 = vst [vmem:[#allocation2 + $0x18] sm:$0xf0] %v413_v29  ;;  %v336_v38 = vmul.f32 %v1386_v21, %v324_v35  ;;  %v337_v39 = vmul.f32 %v1389_v22, %v323_v34  ;;  %v358_v40 = vmul.f32 %v1394_v26, %v346_v37 }
  0xb8   : > { %v359_v41 = vmul.f32 %v1397_v27, %v345_v36 }
  0xb9   : > { %338 = vst [vmem:[#allocation2] sm:$0xf] %v336_v38  ;;  %339 = vst [vmem:[#allocation2 + $0x8] sm:$0xf] %v337_v39  ;;  %v362_v43 = vrot.slane %v358_v40, 4  ;;  %v371_v45 = vpop.permute.xlu1 %370  ;;  %v369_v46 = vpop.permute.xlu0 %368  ;;  %v1465_v38 = vrot.slane %v311_v18, %v1368_v8  ;;  %v1468_v39 = vrot.slane %v311_v18, %v1370_v9 }
  0xba   : > { %v363_v44 = vrot.slane %v359_v41, 4  ;;  %v373_v47 = vsel %vm372_vm3, %v369_v46, %v371_v45  ;;  %v374_v48 = vsel %vm372_vm3, %v371_v45, %v369_v46 }
  0xbb   : > { %366 = vst [vmem:[#allocation2] sm:$0xf0] %v362_v43  ;;  %v386_v49 = vmul.f32 %v1401_v32, %v374_v48  ;;  %v387_v50 = vmul.f32 %v1404_v33, %v373_v47 }
  0xbc   : > { %367 = vst [vmem:[#allocation2 + $0x8] sm:$0xf0] %v363_v44 }
  0xbd   : > { %388 = vst [vmem:[#allocation2 + $0x10] sm:$0xf] %v386_v49  ;;  %389 = vst [vmem:[#allocation2 + $0x18] sm:$0xf] %v387_v50  ;;  %v423_v54 = vpop.permute.xlu1 %422  ;;  %v421_v55 = vpop.permute.xlu0 %420 }
  0xbe   : > { %v425_v56 = vsel %vm424_vm4, %v421_v55, %v423_v54  ;;  %v426_v57 = vsel %vm424_vm4, %v423_v54, %v421_v55  ;;  %v292_v54 = vld [vmem:[%s1626_s2] sm:$0xff] }
  0xbf   : > { %v438_v58 = vmul.f32 %v1426_v51, %v425_v56  ;;  %v439_v59 = vmul.f32 %v1429_v52, %v426_v57 }
  0xc1   : > { %v442_v63 = vrot.slane %v438_v58, 4  ;;  %v443_v3 = vrot.slane %v439_v59, 4  ;;  %v473_v4 = vpop.permute.xlu1 %472  ;;  %v471_v5 = vpop.permute.xlu0 %470 }
  0xc2   : > { %v475_v6 = vsel %vm474_vm5, %v471_v5, %v473_v4  ;;  %v476_v10 = vsel %vm474_vm5, %v473_v4, %v471_v5  ;;  %v520_v20 = vld [vmem:[#allocation2] sm:$0xff] }
  0xc3   : > { %446 = vst [vmem:[#allocation2 + $0x20] sm:$0xf0] %v442_v63  ;;  %447 = vst [vmem:[#allocation2 + $0x28] sm:$0xf0] %v443_v3  ;;  %v488_v11 = vmul.f32 %v1439_v60, %v475_v6  ;;  %v489_v12 = vmul.f32 %v1442_v61, %v476_v10  ;;  %v521_v17 = vld [vmem:[#allocation2 + $0x8] sm:$0xff] }
  0xc4   : > { %v523_v19 = vld [vmem:[#allocation2 + $0x18] sm:$0xff]  ;;  %v522_v23 = vld [vmem:[#allocation2 + $0x10] sm:$0xff] }
  0xc5   : > { %v492_v24 = vrot.slane %v488_v11, 4  ;;  %v493_v25 = vrot.slane %v489_v12, 4  ;;  %v451_v28 = vpop.permute.xlu1 %450  ;;  %v449_v29 = vpop.permute.xlu0 %448  ;;  %v993_v30 = vpack.c.bf16 %v523_v19, %v521_v17  ;;  %v995_v31 = vpack.c.bf16 %v522_v23, %v520_v20 }
  0xc6   : > { %v453_v34 = vsel %vm452_vm6, %v449_v29, %v451_v28  ;;  %v454_v35 = vsel %vm452_vm6, %v451_v28, %v449_v29 }
  0xc7   : > { %496 = vst [vmem:[#allocation2 + $0x30] sm:$0xf0] %v492_v24  ;;  %497 = vst [vmem:[#allocation2 + $0x38] sm:$0xf0] %v493_v25  ;;  %v466_v36 = vmul.f32 %v1452_v15, %v453_v34  ;;  %v467_v37 = vmul.f32 %v1455_v16, %v454_v35  ;;  %994 = vmatprep.subr.bf16.mxu0 %v993_v30 }
  0xc8   : > { %996 = vmatpush1.bf16.msra.mxu0 %v995_v31 }
  0xc9   : > { %468 = vst [vmem:[#allocation2 + $0x30] sm:$0xf] %v466_v36  ;;  %469 = vst [vmem:[#allocation2 + $0x38] sm:$0xf] %v467_v37  ;;  %v501_v40 = vpop.permute.xlu1 %500  ;;  %v499_v41 = vpop.permute.xlu0 %498 }
  0xca   : > { %v503_v42 = vsel %vm502_vm7, %v499_v41, %v501_v40  ;;  %v504_v43 = vsel %vm502_vm7, %v501_v40, %v499_v41  ;;  %v525_v8 = vld [vmem:[#allocation2 + $0x28] sm:$0xff]  ;;  %v524_v46 = vld [vmem:[#allocation2 + $0x20] sm:$0xff] }
  0xcb   : > { %v516_v44 = vmul.f32 %v1465_v38, %v503_v42  ;;  %v517_v45 = vmul.f32 %v1468_v39, %v504_v43 }
  0xcd   : > { %518 = vst [vmem:[#allocation2 + $0x40] sm:$0xf] %v516_v44  ;;  %519 = vst [vmem:[#allocation2 + $0x48] sm:$0xf] %v517_v45 }
  0xd0   : > { %v527_v9 = vld [vmem:[#allocation2 + $0x38] sm:$0xff]  ;;  %v526_v47 = vld [vmem:[#allocation2 + $0x30] sm:$0xff] }
  0xd1   : > { %v997_v48 = vpack.c.bf16 %v527_v9, %v525_v8  ;;  %v999_v49 = vpack.c.bf16 %v526_v47, %v524_v46 }
  0xd3   : > { %998 = vmatprep.subr.bf16.mxu0 %v997_v48 }
  0xd4   : > { %1000 = vmatpush1.bf16.msra.mxu0 %v999_v49  ;;  %v529_v50 = vld [vmem:[#allocation2 + $0x48] sm:$0xf]  ;;  %v528_v53 = vld [vmem:[#allocation2 + $0x40] sm:$0xf] }
  0xd5   : > { %979 = vmatprep.subr.msk.mxu0 %vm539_vm8, %v529_v50 }
  0xd8   : > { %980 = vmatpush1.msk.msra.mxu0 %vm539_vm8, %v528_v53 }
  0xd9   : > { %981 = vmatmul.mubr.msk.f32.vlgmr.msra.gmra.mrb[0].mxu0 %vm535_vm9, %v292_v54  ;;  %982 = vmatprep.subr.msk.mxu0 %vm539_vm8, %v1330_v1  ;;  %v295_v1 = vld [vmem:[%s1629_s5] sm:$0xff] }
  0xda   : > { %983 = vmatpush1.msk.msra.mxu0 %vm539_vm8, %v1321_v0  ;;  %791 = vmatprep.mubr.f32.mxu0 %v1190_v2  ;;  %v533_v55 = vpop.permute.xlu0 %532  ;;  %v296_v0 = vld [vmem:[%s1630_s6] sm:$0xff] }
  0xdd   : > { %984 = vmatmul.mubr.msk.f32.vlgmr.msra.gmra.mrb[2].mxu0 %vm719_vm10, %v296_v0 }
 0x1ac   : > { %v612_v56 = vpop.f32.mrb[0].mxu0 }
 0x1ad   : > { %v613_v57 = vadd.f32 %v612_v56, %v533_v55  ;;  %v614_v58 = vpop.f32.mrb[1].mxu0 }
 0x1ae   : > { %v615_v62 = vadd.f32 %v614_v58, %v533_v55 }
 0x1af   : > { %v1482_v59 = vmax.f32 %v613_v57, 0.0 }
 0x1b0   : > { %v1488_v63 = vmax.f32 %v615_v62, 0.0 }
 0x1b1   : > { %629 = vrot.lane.b32.xlu0 %v1482_v59, %s1183_s13  ;;  %619 = vrot.lane.b32.xlu1 %v1482_v59, %s1184_s22 }
 0x1b5   : > { %639 = vrot.lane.b32.xlu0 %v1482_v59, %s1185_s23  ;;  %621 = vrot.lane.b32.xlu1 %v1488_v63, %s1184_s22 }
 0x1b9   : > { %649 = vrot.lane.b32.xlu0 %v1482_v59, %s1182_s15  ;;  %631 = vrot.lane.b32.xlu1 %v1488_v63, %s1183_s13 }
 0x1bd   : > { %661 = vrot.lane.b32.xlu0 %v1482_v59, %s1186_s29  ;;  %641 = vrot.lane.b32.xlu1 %v1488_v63, %s1185_s23 }
 0x1c1   : > { %671 = vrot.lane.b32.xlu0 %v1482_v59, %s1188_s9  ;;  %651 = vrot.lane.b32.xlu1 %v1488_v63, %s1182_s15 }
 0x1c5   : > { %681 = vrot.lane.b32.xlu0 %v1482_v59, %s1187_s8  ;;  %663 = vrot.lane.b32.xlu1 %v1488_v63, %s1186_s29  ;;  %s284_s29 = sand.u32 1, %s1169_s25  }
 0x1c6   : > { %s885_s16 = scalar_lea.sflag [#allocation6], %s284_s29 }
 0x1c9   : > { %691 = vrot.lane.b32.xlu0 %v1482_v59, %s1189_s14  ;;  %673 = vrot.lane.b32.xlu1 %v1488_v63, %s1188_s9  ;;  %s992_s9 = sshll.u32 %s1254_s28, 8  ;;  %s1192_s28 = smov [#allocation7]  }
 0x1ca   : > { %s1582_s20 = scalar_lea.hbm %s1631_s7, %s992_s9  ;;  %s1115_s13 = sshll.u32 %s1192_s28, 4  ;;  %s1116_s13 = int_to_ptr.vmem [resolvable:$false] %s1115_s13 }
 0x1cb   : > { %s1117_s15 = scalar_lea.vmem %s1116_s13, 512 }
 0x1cd   : > { %875 = vperm.xlu0 %1081, %v295_v1   ;;  %683 = vrot.lane.b32.xlu1 %v1488_v63, %s1187_s8  ;;  %s976_s8 = sshll.u32 %s284_s29, 4 }
 0x1d1   : > { %693 = vrot.lane.b32.xlu1 %v1488_v63, %s1189_s14  ;;  %s286_s14 = scalar_lea.vmem [#allocation7], %s976_s8 }
 0x1d2   : > { %s899_s17 = sshll.u32 %s286_s14, 4  ;;  %s1584_s17 = int_to_ptr.vmem [resolvable:$true] %s899_s17 }
 0x1d3   : > { %s1111_s21 = scalar_lea.vmem %s1584_s17, 256  ;;  %p1118_p2 = scmp.lt.s32.totalorder %s1584_s17, %s1116_s13 }
 0x1d4   : > { %p1112_p6 = scmp.ne.s32.totalorder %s1584_s17, %s1111_s21  ;;  %p1119_p3 = scmp.lt.s32.totalorder %s1117_s15, %s1111_s21 }
 0x1d6   : > { %p1113_p10 = pnand %p1112_p6, %p1642_p9  ;;  %p1120_p4 = por %p1119_p3, %p1118_p2 }
 0x1d8   : > { %p1114_p12 = pneg %p1113_p10 }
 0x1da   : > { %p1121_p7 = pnand %p1120_p4, %p1114_p12 }
 0x223   : > { %v630_v2 = vpop.permute.xlu0 %629  ;;  %v620_v3 = vpop.permute.xlu1 %619 }
 0x227   : > { %v640_v4 = vpop.permute.xlu0 %639  ;;  %v622_v5 = vpop.permute.xlu1 %621 }
 0x228   : > { %v623_v6 = vsel %vm322_vm1, %v620_v3, %v622_v5  ;;  %v624_v10 = vsel %vm322_vm1, %v622_v5, %v620_v3 }
 0x229   : > { %v625_v19 = vmul.f32 %v624_v10, %v1386_v21  ;;  %v626_v23 = vmul.f32 %v623_v6, %v1389_v22 }
 0x22b   : > { %v650_v11 = vpop.permute.xlu0 %649  ;;  %v632_v12 = vpop.permute.xlu1 %631 }
 0x22c   : > { %v633_v17 = vsel %vm344_vm2, %v630_v2, %v632_v12  ;;  %v634_v18 = vsel %vm344_vm2, %v632_v12, %v630_v2 }
 0x22d   : > { %v635_v20 = vmul.f32 %v634_v18, %v1394_v26  ;;  %v636_v24 = vmul.f32 %v633_v17, %v1397_v27 }
 0x22f   : > { %v642_v25 = vpop.permute.xlu1 %641  ;;  %v1001_v28 = vpack.c.bf16 %v636_v24, %v626_v23  ;;  %v1003_v29 = vpack.c.bf16 %v635_v20, %v625_v19  ;;  %v662_v30 = vpop.permute.xlu0 %661 }
 0x230   : > { %v643_v31 = vsel %vm372_vm3, %v640_v4, %v642_v25  ;;  %v644_v34 = vsel %vm372_vm3, %v642_v25, %v640_v4 }
 0x231   : > { %1002 = vmatprep.subr.bf16.mxu1 %v1001_v28  ;;  %v645_v26 = vmul.f32 %v644_v34, %v1401_v32  ;;  %v646_v27 = vmul.f32 %v643_v31, %v1404_v33 }
 0x232   : > { %1004 = vmatpush1.bf16.msra.mxu1 %v1003_v29 }
 0x233   : > { %v652_v35 = vpop.permute.xlu1 %651  ;;  %v672_v40 = vpop.permute.xlu0 %671 }
 0x234   : > { %v653_v21 = vsel %vm394_vm0, %v650_v11, %v652_v35  ;;  %v654_v22 = vsel %vm394_vm0, %v652_v35, %v650_v11 }
 0x235   : > { %v655_v36 = vmul.f32 %v654_v22, %v1374_v13  ;;  %v656_v37 = vmul.f32 %v653_v21, %v1377_v14 }
 0x237   : > { %v664_v41 = vpop.permute.xlu1 %663  ;;  %v1005_v42 = vpack.c.bf16 %v656_v37, %v646_v27  ;;  %v1007_v43 = vpack.c.bf16 %v655_v36, %v645_v26  ;;  %v682_v9 = vpop.permute.xlu0 %681 }
 0x238   : > { %v665_v44 = vsel %vm424_vm4, %v662_v30, %v664_v41  ;;  %v666_v45 = vsel %vm424_vm4, %v664_v41, %v662_v30 }
 0x239   : > { %v667_v8 = vmul.f32 %v665_v44, %v1426_v51  ;;  %v668_v32 = vmul.f32 %v666_v45, %v1429_v52  ;;  %1006 = vmatprep.subr.bf16.mxu1 %v1005_v42 }
 0x23a   : > { %1008 = vmatpush1.bf16.msra.mxu1 %v1007_v43 }
 0x23b   : > { %v674_v33 = vpop.permute.xlu1 %673  ;;  %v1009_v13 = vpack.c.bf16 %v668_v32, %v1488_v63  ;;  %v1011_v14 = vpack.c.bf16 %v667_v8, %v1482_v59  ;;  %v692_v55 = vpop.permute.xlu0 %691 }
 0x23c   : > { %v675_v46 = vsel %vm452_vm6, %v672_v40, %v674_v33  ;;  %v676_v47 = vsel %vm452_vm6, %v674_v33, %v672_v40 }
 0x23d   : > { %1010 = vmatprep.subr.bf16.mxu1 %v1009_v13  ;;  %v677_v49 = vmul.f32 %v675_v46, %v1452_v15  ;;  %v678_v50 = vmul.f32 %v676_v47, %v1455_v16  ;;  %v793_v15 = vpop.f32.mrb[2].mxu0 }
 0x23e   : > { %1012 = vmatpush1.bf16.msra.mxu1 %v1011_v14  ;;  %v795_v16 = vpop.f32.mrb[3].mxu0 }
 0x23f   : > { %v684_v48 = vpop.permute.xlu1 %683 }
 0x240   : > { %v685_v51 = vsel %vm474_vm5, %v682_v9, %v684_v48  ;;  %v686_v52 = vsel %vm474_vm5, %v684_v48, %v682_v9 }
 0x241   : > { %v687_v53 = vmul.f32 %v685_v51, %v1439_v60  ;;  %v688_v54 = vmul.f32 %v686_v52, %v1442_v61  ;;  %v293_v61 = vld [vmem:[%s1628_s4] sm:$0xff] }
 0x243   : > { %v694_v56 = vpop.permute.xlu1 %693  ;;  %v1013_v57 = vpack.c.bf16 %v688_v54, %v678_v50  ;;  %v1015_v58 = vpack.c.bf16 %v687_v53, %v677_v49 }
 0x244   : > { %v696_v59 = vsel %vm502_vm7, %v694_v56, %v692_v55  ;;  %v695_v62 = vsel %vm502_vm7, %v692_v55, %v694_v56 }
 0x245   : > { %v698_v63 = vmul.f32 %v696_v59, %v1468_v39  ;;  %1014 = vmatprep.subr.bf16.mxu1 %v1013_v57  ;;  %v697_v60 = vmul.f32 %v695_v62, %v1465_v38 }
 0x246   : > { %1016 = vmatpush1.bf16.msra.mxu1 %v1015_v58 }
 0x247   : > { %818 = vmatprep.subr.mxu1 %v698_v63 }
 0x24a   : > { %819 = vmatpush1.msra.mxu1 %v697_v60 }
 0x24b   : > { %985 = vmatmul.mubr.msk.f32.vlgmr.msra.gmra.mrb[0].mxu1 %vm798_vm11, %v293_v61 }
 0x24c   : > { %v876_v1 = vpop.permute.xlu0 %875 }
 0x31e   : > { %v868_v7 = vpop.f32.mrb[0].mxu1 }
 0x31f   : > { %v869_v0 = vadd.f32 %v868_v7, %v793_v15  ;;  %v870_v39 = vpop.f32.mrb[1].mxu1 }
 0x320   : > { %v871_v2 = vadd.f32 %v870_v39, %v795_v16 }
 0x321   : > { %v878_v3 = vadd.f32 %v876_v1, %v869_v0 }
 0x322   : > { %v879_v38 = vadd.f32 %v876_v1, %v871_v2 }
 0x323   : > { %v880_v4 = vmax.f32 %v878_v3, 0.0 }
 0x324   : > { %v881_v5 = vmax.f32 %v879_v38, 0.0 }
 0x325   : > { %882 = vst [vmem:[%s286_s14] sm:$0xff] %v880_v4 }
 0x326   : > { %883 = vst [vmem:[%s286_s14 + $0x8] sm:$0xff] %v881_v5 }
 0x327   : > { %1124 = shalt.err (!%p1121_p7)
}
 0x328   : > { %s1125_s22 = scalar_lea.hbm %s1582_s20, 256  ;;  %s1129_s8 = scalar_lea.hbm %s1631_s7, 512 }
 0x329   : > { %p1126_p8 = scmp.ne.s32.totalorder %s1582_s20, %s1125_s22  ;;  %p1130_p1 = scmp.lt.u32.totalorder %s1582_s20, %s1631_s7 }
 0x32a   : > { %p1131_p0 = scmp.lt.u32.totalorder %s1129_s8, %s1125_s22  ;;  %p1133_p6 = scmp.lt.u32.totalorder %s1125_s22, %s1582_s20 }
 0x32b   : > { %p1127_p11 = pnand %p1126_p8, %p1642_p9 }
 0x32c   : > { %p1132_p5 = por %p1131_p0, %p1130_p1 }
 0x32d   : > { %p1128_p13 = pneg %p1127_p11 }
 0x32e   : > { %p1134_p10 = por %p1133_p6, %p1132_p5 }
 0x330   : > { %p1135_p12 = pnand %p1134_p10, %p1128_p13 }
 0x332   : > { %1138 = shalt.err (!%p1135_p12)
}
 0x333   : > { %1023 = dma.vmem_to_hbm [thread:$0]  (%p1642_p9), %s1584_s17, 256, %s1582_s20, %s885_s16  }
 0x334 PF: > { %p1035_p2 = scmp.ge.s32.totalorder %s1177_s27, 2  ;;  %s911_s18 = sand.u32 1, %s1165_s24  }
 0x335   : > { %p1643_p3 = scmp.ne.s32.totalorder %s1636_s12, 0  ;;  %s912_s19 = scalar_lea.sflag [#allocation6], %s911_s18 }
 0x337   : > { %p1030_p4 = pnand %p1035_p2, %p1643_p3 }
 0x339   : > { %1160 = dma.done.wait (!%p1030_p4), %s912_s19, 256  }
 0x33a   : > { %1162 = vsyncadd (!%p1030_p4), %s912_s19, 4294967040  ;;  %p18_p7 = scmp.ge.s32.totalorder %s1258_s30, 4   ;;  %s1644_s24 = smov %s1169_s25 }
 0x33b   : > { %s1645_s25 = smov %s1173_s26  ;;  %s1646_s26 = smov %s1269_s10 }
 0x33c   : > { %s1647_s27 = smov %s1258_s30  ;;  %20 = sbr.rel (!%p18_p7) target bundleno = 4 (0x4), region = 95 }
 0x343   :  { %917 = vsyncpa [#allocation5], 1 }
 0x344   :  { %919 = vsyncpa [#allocation5 + $0x1], 1 }
 0x345   :  { %920 = vsyncpa [#allocation6], 1 }
 0x346   :  { %922 = vsyncpa [#allocation6 + $0x1], 1 }

</bundles_post_ra>
